<compile_context>
chip_gen: v5e
topology: v5e:2x2
jax: 0.10.0
libtpu: 0.0.40
codegen_flags: <defaults>
</compile_context>

<pallas_src>
import jax
import jax.numpy as jnp
from jax.experimental import pallas as pl
from jax.experimental.pallas import tpu as pltpu


def _copy_kernel(x_ref, o_ref):
    # Hot path: pure VMEM load -> VMEM store of one tile.
    o_ref[...] = x_ref[...]


_MAX_COLS = 2048                # lane-dense slab width cap (multiple of 128)
_TARGET_TILE_BYTES = 8 << 20    # ~8 MiB per tile buffer
_VMEM_LIMIT_BYTES = 40 << 20    # 2 in + 2 out double buffers (~32 MiB) + headroom
_MIN_GRID_STEPS = 4             # >= 2x TensorCore count (v7x megacore) when possible


def _round_down(v, m):
    return (v // m) * m


def _choose_lane_dense_view(total, itemsize):
    """total % 128 == 0: pick (rows, cols, tile_rows) with cols % 128 == 0."""
    lane_units = total // 128
    max_d = max(1, min(lane_units, _MAX_COLS // 128))
    d = 1
    for cand in range(max_d, 0, -1):
        if lane_units % cand == 0:
            d = cand
            break
    cols = 128 * d
    rows = total // cols
    tile_rows = max(32, _round_down(_TARGET_TILE_BYTES // (cols * itemsize), 32))
    if rows >= _MIN_GRID_STEPS * 32:
        # Keep at least _MIN_GRID_STEPS grid steps before growing tiles further.
        tile_rows = min(tile_rows, max(32, _round_down(rows // _MIN_GRID_STEPS, 32)))
    if tile_rows >= rows:
        tile_rows = rows  # block dim == full array dim: always a legal block shape
    return rows, cols, tile_rows


def _choose_ragged_view(total, itemsize):
    """total % 128 != 0: block last dim == full cols (bypasses the 128-lane rule)."""
    cols = 1
    for cand in range(min(total, _MAX_COLS), 0, -1):
        if total % cand == 0:
            cols = cand
            break
    rows = total // cols
    # VMEM footprint pads the last dim to a multiple of 128 lanes — budget for it.
    cols_padded = ((cols + 127) // 128) * 128
    tile_rows = max(8, _round_down(_TARGET_TILE_BYTES // (cols_padded * itemsize), 8))
    if rows >= _MIN_GRID_STEPS * 8:
        tile_rows = min(tile_rows, max(8, _round_down(rows // _MIN_GRID_STEPS, 8)))
    if tile_rows >= rows:
        tile_rows = rows  # full-dim block: always legal
    return rows, cols, tile_rows


def _tiled_copy(x2d, rows, cols, tile_rows, nbytes):
    grid = (pl.cdiv(rows, tile_rows),)  # ragged last block masked by Pallas
    return pl.pallas_call(
        _copy_kernel,
        out_shape=jax.ShapeDtypeStruct((rows, cols), x2d.dtype),
        grid_spec=pltpu.PrefetchScalarGridSpec(
            num_scalar_prefetch=0,
            grid=grid,
            in_specs=[pl.BlockSpec((tile_rows, cols), lambda i: (i, 0))],
            out_specs=pl.BlockSpec((tile_rows, cols), lambda i: (i, 0)),
        ),
        compiler_params=pltpu.CompilerParams(
            dimension_semantics=("parallel",),
            vmem_limit_bytes=_VMEM_LIMIT_BYTES,
        ),
        cost_estimate=pl.CostEstimate(
            flops=0, transcendentals=0, bytes_accessed=2 * nbytes
        ),
    )(x2d)


def template_model_forward(x, *, in_place=False):
    """Identity forward, matching TemplateModel.forward(x) -> x."""
    if in_place:
        # Donated / in-place case: an identity needs zero HBM traffic, so do not
        # launch a copy kernel at all (returning x is metadata-only).
        return x

    orig_shape = x.shape
    total = x.size
    if total == 0:
        return x
    itemsize = jnp.dtype(x.dtype).itemsize
    nbytes = total * itemsize

    if total % 128 == 0:
        rows, cols, tile_rows = _choose_lane_dense_view(total, itemsize)
    else:
        rows, cols, tile_rows = _choose_ragged_view(total, itemsize)

    x2d = x.reshape(rows, cols)  # contiguous flatten, no padding copy
    out2d = _tiled_copy(x2d, rows, cols, tile_rows, nbytes)
    return out2d.reshape(orig_shape)
    # TODO(synk): a direct HBM->HBM DMA path (memory_space=pl.ANY + chunked
    # make_async_copy) would remove the VMEM round trip entirely; the BlockSpec
    # pipeline above is kept for portability/robustness.


if __name__ == "__main__":
    key = jax.random.PRNGKey(0)
    # Small NCHW input consistent with a generic image-style forward.
    x = jax.random.normal(key, (2, 4, 16, 16), dtype=jnp.float32)

    y = template_model_forward(x)
    jax.block_until_ready(y)
    assert y.shape == x.shape and y.dtype == x.dtype
    assert bool(jnp.array_equal(y, x)), "identity kernel mismatch"

    # Also exercise the ragged (total % 128 != 0) path.
    x2 = jax.random.normal(jax.random.PRNGKey(0), (3, 5, 7), dtype=jnp.float32)
    y2 = template_model_forward(x2)
    jax.block_until_ready(y2)
    assert y2.shape == x2.shape and bool(jnp.array_equal(y2, x2)), "ragged mismatch"

    # Donated/in-place fast path: no kernel, zero HBM traffic.
    y3 = template_model_forward(x, in_place=True)
    assert y3 is x

    print("KERNEL_OK")
</pallas_src>

<mosaic_0001>
module attributes {stable_mosaic.version = 11 : i64} {
  func.func @_copy_kernel(%arg0: i32, %arg1: memref<1x2048xf32, #tpu.memory_space<vmem>>, %arg2: memref<1x2048xf32, #tpu.memory_space<vmem>>) attributes {dimension_semantics = [#tpu.dimension_semantics<parallel>], iteration_bounds = array<i64: 1>, scalar_prefetch = 0 : i64, scratch_operands = 0 : i64, tpu.core_type = #tpu.core_type<tc>, window_params = [{transform_indices = @transform_0, window_bounds = array<i64: 1, 2048>}, {transform_indices = @transform_1, window_bounds = array<i64: 1, 2048>}]} {
    %c0 = arith.constant 0 : index
    %c0_0 = arith.constant 0 : index
    %0 = vector.load %arg1[%c0, %c0_0] : memref<1x2048xf32, #tpu.memory_space<vmem>>, vector<1x2048xf32>
    %c0_1 = arith.constant 0 : index
    %c0_2 = arith.constant 0 : index
    %1 = vector.load %arg2[%c0_1, %c0_2] : memref<1x2048xf32, #tpu.memory_space<vmem>>, vector<1x2048xf32>
    tpu.vector_store %arg2[%c0_1, %c0_2], %0 {strides = array<i32>} : memref<1x2048xf32, #tpu.memory_space<vmem>>, vector<1x2048xf32>,
    return
  }
  func.func @transform_0(%arg0: i32) -> (i32, i32) {
    %c0_i32 = arith.constant 0 : i32
    %c0_i32_0 = arith.constant 0 : i32
    return %arg0, %c0_i32 : i32, i32
  }
  func.func @transform_1(%arg0: i32) -> (i32, i32) {
    %c0_i32 = arith.constant 0 : i32
    %c0_i32_0 = arith.constant 0 : i32
    return %arg0, %c0_i32 : i32, i32
  }
}

</mosaic_0001>

<bundles_post_ra>
// kernel: tpu_custom_call.1
= control target key start
LH: loop header
LB: loop body
LE: loop exit
PB: predicated region body
PF: predicated region fallthrough
CT: control target
= control target key end

     0   :  { %6 = vsyncpa [#allocation3], 0  ;;  %s116_s0 = inlined_call_operand.hbm [shape: f32[1,2048], index: 0, kind: input, shape index: {}]   ;;  %s117_s1 = inlined_call_operand.hbm [shape: f32[1,2048], index: 1, kind: output, shape index: {}]  }
   0x1   :  { %7 = vsyncpa [#allocation4], 0  ;;  %s13_s8 = sshll.u32 %s116_s0, 4  ;;  %s98_s9 = smov [#allocation2]   ;;  %s14_s8 = int_to_ptr.hbm [resolvable:$true] %s13_s8 }
   0x2   :  { %s15_s10 = sshll.u32 %s98_s9, 4  ;;  %s16_s10 = int_to_ptr.vmem [resolvable:$true] %s15_s10 }
   0x3   :  { %18 = dma.hbm_to_vmem [thread:$0]  %s14_s8, 256, %s16_s10, [#allocation3]  }
   0x4   :  { %94 = dma.done.wait [#allocation3], 256  }
   0x5   :  { %95 = vsyncadd [#allocation3], 4294967040  ;;  %s99_s11 = smov [#allocation5]   ;;  %s34_s15 = sshll.u32 %s117_s1, 4  ;;  %v23_v0 = vld [vmem:[#allocation2] sm:$0xff]  ;;  %v24_v1 = vld [vmem:[#allocation2 + $0x8] sm:$0xff]  ;;  %s35_s15 = int_to_ptr.hbm [resolvable:$true] %s34_s15 }
   0x6   :  { %s32_s12 = sshll.u32 %s99_s11, 4  ;;  %25 = vst [vmem:[#allocation5] sm:$0xff] %v23_v0  ;;  %s33_s12 = int_to_ptr.vmem [resolvable:$true] %s32_s12 }
   0x7   :  { %26 = vst [vmem:[#allocation5 + $0x8] sm:$0xff] %v24_v1 }
   0x8   :  { %37 = dma.vmem_to_hbm [thread:$0]  %s33_s12, 256, %s35_s15, [#allocation4]  }
   0x9   :  { %96 = dma.done.wait [#allocation4], 256  }
   0xa   :  { %97 = vsyncadd [#allocation4], 4294967040 }
   0xb   :  { %42 = vsyncpa [#allocation3], 1 }
   0xc   :  { %43 = vsyncpa [#allocation4], 1 }

</bundles_post_ra>
